<compile_context>
chip_gen: v6e
topology: v6e:2x2x1
jax: 0.10.0
libtpu: 0.0.40
codegen_flags: <defaults>
</compile_context>

<pallas_src>
import jax
import jax.numpy as jnp
from jax.experimental import pallas as pl
from jax.experimental.pallas import tpu as pltpu


def _linear_kernel(x_ref, w_ref, b_ref, o_ref):
    # x_ref: (tm, K), w_ref: (K, N), b_ref: (1, N) f32, o_ref: (tm, N)
    acc = jnp.dot(x_ref[...], w_ref[...], preferred_element_type=jnp.float32)
    o_ref[...] = (acc + b_ref[...]).astype(o_ref.dtype)


def _round_up(a, m):
    return ((a + m - 1) // m) * m


def _sublane_granule(dtype):
    # Sub-32-bit dtypes pack along sublanes: 8 rows for 4-byte, 16 for 2-byte,
    # 32 for 1-byte. Rounding tiles to the granule keeps stores unmasked.
    itemsize = jnp.dtype(dtype).itemsize
    if itemsize >= 4:
        return 8
    if itemsize == 2:
        return 16
    return 32


def _choose_tm(M, granule):
    if M <= 256:
        # Small M: single block (still a multiple of the packing granule).
        return _round_up(M, granule)
    if M <= 4096:
        # Mid-size M: guarantee >= 2 grid steps so v7x megacore can split the
        # "parallel" M axis across both TensorCores.
        return _round_up((M + 1) // 2, granule)
    # Large M: big tile to amortize per-step overhead; double-buffered x+y at
    # tm=2048 f32 is ~6 MiB -> well under the 32 MiB scoped-VMEM default on v7x.
    return 2048


def linear_pallas(x, w, b):
    """y = x @ w + b, where x: (..., K), w: (K, N), b: (N,)."""
    orig_shape = x.shape
    K = orig_shape[-1]
    N = w.shape[1]
    assert w.shape[0] == K and b.shape == (N,)

    x2d = x.reshape(-1, K)
    M = x2d.shape[0]

    granule = _sublane_granule(x.dtype)
    tm = _choose_tm(M, granule)
    grid_m = pl.cdiv(M, tm)

    # Bias pre-cast to f32 once in the wrapper (kernel accumulates in f32).
    b2d = b.astype(jnp.float32).reshape(1, N)

    out = pl.pallas_call(
        _linear_kernel,
        out_shape=jax.ShapeDtypeStruct((M, N), x.dtype),
        grid_spec=pl.GridSpec(
            grid=(grid_m,),
            in_specs=[
                pl.BlockSpec((tm, K), lambda i: (i, 0)),   # stream x rows over M
                pl.BlockSpec((K, N), lambda i: (0, 0)),    # weight: VMEM-resident
                pl.BlockSpec((1, N), lambda i: (0, 0)),    # bias: VMEM-resident, f32
            ],
            # Lane-dense full-N store; ragged last M block is masked by Pallas.
            out_specs=pl.BlockSpec((tm, N), lambda i: (i, 0)),
        ),
        compiler_params=pltpu.CompilerParams(
            dimension_semantics=("parallel",),  # megacore-shardable on v7x
        ),
    )(x2d, w, b2d)

    return out.reshape(*orig_shape[:-1], N)


def init_params(key, in_dim=128, out_dim=256, dtype=jnp.float32):
    # Match PyTorch nn.Linear default init: U(-1/sqrt(in_dim), 1/sqrt(in_dim)).
    kw, kb = jax.random.split(key)
    bound = 1.0 / jnp.sqrt(jnp.array(in_dim, dtype=jnp.float32))
    # Stored as (in_dim, out_dim) == W^T relative to PyTorch's (out_dim, in_dim).
    w = jax.random.uniform(kw, (in_dim, out_dim), dtype=dtype, minval=-bound, maxval=bound)
    b = jax.random.uniform(kb, (out_dim,), dtype=dtype, minval=-bound, maxval=bound)
    return w, b


if __name__ == "__main__":
    in_dim, out_dim = 128, 256
    batch, seq = 2, 8

    key = jax.random.PRNGKey(0)
    kx, kp = jax.random.split(key)
    x = jax.random.normal(kx, (batch, seq, in_dim), dtype=jnp.float32)
    w, b = init_params(kp, in_dim, out_dim)

    y = linear_pallas(x, w, b)
    y = jax.block_until_ready(y)

    # Correctness check against plain-JAX reference.
    y_ref = x @ w + b
    assert y.shape == (batch, seq, out_dim)
    assert jnp.allclose(y, y_ref, atol=1e-5, rtol=1e-5)

    print("KERNEL_OK")
</pallas_src>

<mosaic_0001>
module attributes {stable_mosaic.version = 11 : i64} {
  func.func @_linear_kernel(%arg0: i32, %arg1: memref<16x128xf32, #tpu.memory_space<vmem>>, %arg2: memref<128x256xf32, #tpu.memory_space<vmem>>, %arg3: memref<1x256xf32, #tpu.memory_space<vmem>>, %arg4: memref<16x256xf32, #tpu.memory_space<vmem>>) attributes {dimension_semantics = [#tpu.dimension_semantics<parallel>], iteration_bounds = array<i64: 1>, scalar_prefetch = 0 : i64, scratch_operands = 0 : i64, tpu.core_type = #tpu.core_type<tc>, window_params = [{transform_indices = @transform_0, window_bounds = array<i64: 16, 128>}, {pipeline_mode = #tpu.pipeline_mode<synchronous>, transform_indices = @transform_1, window_bounds = array<i64: 128, 256>}, {pipeline_mode = #tpu.pipeline_mode<synchronous>, transform_indices = @transform_2, window_bounds = array<i64: 1, 256>}, {transform_indices = @transform_3, window_bounds = array<i64: 16, 256>}]} {
    %c0 = arith.constant 0 : index
    %c0_0 = arith.constant 0 : index
    %0 = vector.load %arg1[%c0, %c0_0] : memref<16x128xf32, #tpu.memory_space<vmem>>, vector<16x128xf32>
    %c0_1 = arith.constant 0 : index
    %c0_2 = arith.constant 0 : index
    %1 = vector.load %arg2[%c0_1, %c0_2] : memref<128x256xf32, #tpu.memory_space<vmem>>, vector<128x256xf32>
    %cst = arith.constant dense<0.000000e+00> : vector<16x256xf32>
    %2 = tpu.matmul %0, %1, %cst {dimension_numbers = #tpu.dot_dimension_numbers<[1], [0], [0], [1], [0, 0, 1, 1], [], []>} : vector<16x128xf32>, vector<128x256xf32>, vector<16x256xf32> -> vector<16x256xf32>
    %c0_3 = arith.constant 0 : index
    %c0_4 = arith.constant 0 : index
    %3 = vector.load %arg3[%c0_3, %c0_4] : memref<1x256xf32, #tpu.memory_space<vmem>>, vector<1x256xf32>
    %4 = vector.broadcast %3 : vector<1x256xf32> to vector<16x256xf32>
    %5 = arith.addf %2, %4 : vector<16x256xf32>
    %c0_5 = arith.constant 0 : index
    %c0_6 = arith.constant 0 : index
    %6 = vector.load %arg4[%c0_5, %c0_6] : memref<16x256xf32, #tpu.memory_space<vmem>>, vector<16x256xf32>
    tpu.vector_store %arg4[%c0_5, %c0_6], %5 {strides = array<i32>} : memref<16x256xf32, #tpu.memory_space<vmem>>, vector<16x256xf32>,
    return
  }
  func.func @transform_0(%arg0: i32) -> (i32, i32) {
    %c0_i32 = arith.constant 0 : i32
    %c0_i32_0 = arith.constant 0 : i32
    return %arg0, %c0_i32 : i32, i32
  }
  func.func @transform_1(%arg0: i32) -> (i32, i32) {
    %c0_i32 = arith.constant 0 : i32
    %c0_i32_0 = arith.constant 0 : i32
    %c0_i32_1 = arith.constant 0 : i32
    return %c0_i32, %c0_i32_0 : i32, i32
  }
  func.func @transform_2(%arg0: i32) -> (i32, i32) {
    %c0_i32 = arith.constant 0 : i32
    %c0_i32_0 = arith.constant 0 : i32
    %c0_i32_1 = arith.constant 0 : i32
    return %c0_i32, %c0_i32_0 : i32, i32
  }
  func.func @transform_3(%arg0: i32) -> (i32, i32) {
    %c0_i32 = arith.constant 0 : i32
    %c0_i32_0 = arith.constant 0 : i32
    return %arg0, %c0_i32 : i32, i32
  }
}

</mosaic_0001>

<bundles_post_ra>
// kernel: tpu_custom_call.1
= control target key start
LH: loop header
LB: loop body
LE: loop exit
PB: predicated region body
PF: predicated region fallthrough
CT: control target
= control target key end

     0   :  { %8 = vsyncpa [#allocation3], 0  ;;  %s340_s0 = inlined_call_operand.hbm [shape: f32[16,128], index: 0, kind: input, shape index: {}]   ;;  %s341_s1 = inlined_call_operand.hbm [shape: f32[128,256], index: 1, kind: input, shape index: {}]   ;;  %s342_s2 = inlined_call_operand.vmem [shape: f32[1,256], index: 2, kind: input, shape index: {}]   ;;  %s343_s3 = inlined_call_operand.hbm [shape: f32[16,256], index: 3, kind: output, shape index: {}]  }
   0x1   :  { %9 = vsyncpa [#allocation6], 0 }
   0x2   :  { %10 = vsyncpa [#allocation4], 0  ;;  %s294_s12 = smov [#allocation2]  }
   0x3   :  { %s16_s13 = sshll.u32 %s294_s12, 4  ;;  %s17_s13 = int_to_ptr.vmem [resolvable:$true] %s16_s13 }
   0x4   :  { %s236_s14 = scalar_lea.vmem %s17_s13, 256  ;;  %p241_p1 = scmp.lt.s32.totalorder %s17_s13, %s17_s13 }
   0x5   :  { %p237_p0 = scmp.ne.s32.totalorder %s17_s13, %s236_s14  ;;  %p242_p2 = scmp.lt.s32.totalorder %s236_s14, %s236_s14 }
   0x7   :  { %p243_p3 = por %p242_p2, %p241_p1 }
   0x9   :  { %p244_p4 = pnand %p243_p3, %p237_p0 }
   0xb   :  { %247 = shalt.err (!%p244_p4)
}
   0xc   :  { %s295_s15 = smov 128   ;;  %s296_s16 = smov 8  }
   0xd   :  { %22 = dma.hbm_to_vmem [thread:$0]  %s340_s0, 256, %s17_s13, [#allocation3], %s295_s15, %s295_s15, %s296_s16  }
   0xe   :  { %s297_s19 = smov [#allocation5]  }
   0xf   :  { %s28_s20 = sshll.u32 %s297_s19, 4  ;;  %s29_s20 = int_to_ptr.vmem [resolvable:$true] %s28_s20 }
  0x10   :  { %s256_s21 = scalar_lea.vmem %s29_s20, 4096  ;;  %p261_p6 = scmp.lt.s32.totalorder %s29_s20, %s29_s20 }
  0x11   :  { %p257_p5 = scmp.ne.s32.totalorder %s29_s20, %s256_s21  ;;  %p262_p7 = scmp.lt.s32.totalorder %s256_s21, %s256_s21 }
  0x13   :  { %p263_p8 = por %p262_p7, %p261_p6 }
  0x15   :  { %p264_p9 = pnand %p263_p8, %p257_p5 }
  0x17   :  { %267 = shalt.err (!%p264_p9)
}
  0x18   :  { %s298_s22 = smov 256   ;;  %s299_s23 = smov 16  }
  0x19   :  { %34 = dma.hbm_to_vmem [thread:$0]  %s341_s1, 4096, %s29_s20, [#allocation6], %s298_s22, %s298_s22, %s299_s23  }
  0x1a   :  { %288 = dma.done.wait [#allocation3], 256  }
  0x1b   :  { %289 = vsyncadd [#allocation3], 4294967040 }
  0x1c   :  { %290 = dma.done.wait [#allocation6], 4096  }
  0x1d   :  { %291 = vsyncadd [#allocation6], 4294963200  ;;  %v300_v0 = vmov 0.0   ;;  %v76_v1 = vld [vmem:[#allocation5 + $0xf8] sm:$0xff]  ;;  %v75_v2 = vld [vmem:[#allocation5 + $0xf0] sm:$0xff]  ;;  %v79_v35 = vlaneseq  ;;  %s301_s26 = smov [#allocation7]  }
  0x1e   :  { %153 = vmatprep.mubr.f32.mxu0 %v300_v0  ;;  %159 = vmatprep.mubr.f32.mxu1 %v300_v0  ;;  %v74_v3 = vld [vmem:[#allocation5 + $0xe8] sm:$0xff]  ;;  %v73_v4 = vld [vmem:[#allocation5 + $0xe0] sm:$0xff]  ;;  %v72_v5 = vld [vmem:[#allocation5 + $0xd8] sm:$0xff]  ;;  %s175_s27 = sshll.u32 %s301_s26, 4  ;;  %s176_s27 = int_to_ptr.vmem [resolvable:$true] %s175_s27 }
  0x1f   :  { %89 = vmatprep.subr.mxu0 %v76_v1  ;;  %188 = vmatprep.subr.mxu1 %v76_v1  ;;  %v71_v6 = vld [vmem:[#allocation5 + $0xd0] sm:$0xff]  ;;  %v70_v7 = vld [vmem:[#allocation5 + $0xc8] sm:$0xff]  ;;  %v69_v8 = vld [vmem:[#allocation5 + $0xc0] sm:$0xff]  ;;  %v80_v36 = vshrl.u32 %v79_v35, 7  ;;  %s268_s28 = scalar_lea.vmem %s176_s27, 512  ;;  %p273_p11 = scmp.lt.s32.totalorder %s176_s27, %s176_s27 }
  0x20   :  { %90 = vmatpush1.msra.mxu0 %v75_v2  ;;  %204 = vmatpush1.msra.mxu1 %v75_v2  ;;  %v68_v9 = vld [vmem:[#allocation5 + $0xb8] sm:$0xff]  ;;  %v67_v10 = vld [vmem:[#allocation5 + $0xb0] sm:$0xff]  ;;  %v66_v11 = vld [vmem:[#allocation5 + $0xa8] sm:$0xff]  ;;  %p269_p10 = scmp.ne.s32.totalorder %s176_s27, %s268_s28  ;;  %p274_p12 = scmp.lt.s32.totalorder %s268_s28, %s268_s28 }
  0x21   :  { %91 = vmatprep.subr.mxu0 %v74_v3  ;;  %189 = vmatprep.subr.mxu1 %v74_v3  ;;  %v65_v12 = vld [vmem:[#allocation5 + $0xa0] sm:$0xff]  ;;  %v64_v13 = vld [vmem:[#allocation5 + $0x98] sm:$0xff]  ;;  %v63_v14 = vld [vmem:[#allocation5 + $0x90] sm:$0xff]  ;;  %v81_v37 = vsub.s32 0, %v80_v36  ;;  %v85_v39 = vsub.s32 1, %v80_v36 }
  0x22   :  { %92 = vmatpush1.msra.mxu0 %v73_v4  ;;  %205 = vmatpush1.msra.mxu1 %v73_v4  ;;  %v62_v15 = vld [vmem:[#allocation5 + $0x88] sm:$0xff]  ;;  %v61_v16 = vld [vmem:[#allocation5 + $0x80] sm:$0xff]  ;;  %v60_v17 = vld [vmem:[#allocation5 + $0x78] sm:$0xff]  ;;  %p275_p13 = por %p274_p12, %p273_p11 }
  0x23   :  { %93 = vmatprep.subr.mxu0 %v72_v5  ;;  %190 = vmatprep.subr.mxu1 %v72_v5  ;;  %v59_v18 = vld [vmem:[#allocation5 + $0x70] sm:$0xff]  ;;  %v58_v19 = vld [vmem:[#allocation5 + $0x68] sm:$0xff]  ;;  %v57_v20 = vld [vmem:[#allocation5 + $0x60] sm:$0xff] }
  0x24   :  { %94 = vmatpush1.msra.mxu0 %v71_v6  ;;  %206 = vmatpush1.msra.mxu1 %v71_v6  ;;  %v56_v21 = vld [vmem:[#allocation5 + $0x58] sm:$0xff]  ;;  %v55_v22 = vld [vmem:[#allocation5 + $0x50] sm:$0xff]  ;;  %v54_v23 = vld [vmem:[#allocation5 + $0x48] sm:$0xff]  ;;  %p276_p0 = pnand %p275_p13, %p269_p10 }
  0x25   :  { %95 = vmatprep.subr.mxu0 %v70_v7  ;;  %191 = vmatprep.subr.mxu1 %v70_v7  ;;  %v53_v24 = vld [vmem:[#allocation5 + $0x40] sm:$0xff]  ;;  %v52_v25 = vld [vmem:[#allocation5 + $0x38] sm:$0xff]  ;;  %v51_v26 = vld [vmem:[#allocation5 + $0x30] sm:$0xff] }
  0x26   :  { %96 = vmatpush1.msra.mxu0 %v69_v8  ;;  %207 = vmatpush1.msra.mxu1 %v69_v8  ;;  %v50_v27 = vld [vmem:[#allocation5 + $0x28] sm:$0xff]  ;;  %v49_v28 = vld [vmem:[#allocation5 + $0x20] sm:$0xff]  ;;  %v48_v29 = vld [vmem:[#allocation5 + $0x18] sm:$0xff] }
  0x27   :  { %97 = vmatprep.subr.mxu0 %v68_v9  ;;  %192 = vmatprep.subr.mxu1 %v68_v9  ;;  %v47_v30 = vld [vmem:[#allocation5 + $0x10] sm:$0xff]  ;;  %v46_v31 = vld [vmem:[#allocation5 + $0x8] sm:$0xff]  ;;  %v45_v32 = vld [vmem:[#allocation5] sm:$0xff] }
  0x28   :  { %98 = vmatpush1.msra.mxu0 %v67_v10  ;;  %208 = vmatpush1.msra.mxu1 %v67_v10  ;;  %v43_v33 = vld [vmem:[#allocation2] sm:$0xff]  ;;  %v44_v34 = vld [vmem:[#allocation2 + $0x8] sm:$0xff] }
  0x29   :  { %99 = vmatprep.subr.mxu0 %v66_v11  ;;  %193 = vmatprep.subr.mxu1 %v66_v11  ;;  %v77_v38 = vld [vmem:[%s342_s2] sm:$0x3] }
  0x2a   :  { %100 = vmatpush1.msra.mxu0 %v65_v12  ;;  %209 = vmatpush1.msra.mxu1 %v65_v12  ;;  %v82_v40 = vrot.slane %v77_v38, %v81_v37  ;;  %v86_v41 = vrot.slane %v77_v38, %v85_v39 }
  0x2b   :  { %101 = vmatprep.subr.mxu0 %v64_v13  ;;  %194 = vmatprep.subr.mxu1 %v64_v13 }
  0x2c   :  { %102 = vmatpush1.msra.mxu0 %v63_v14  ;;  %210 = vmatpush1.msra.mxu1 %v63_v14 }
  0x2d   :  { %103 = vmatprep.subr.mxu0 %v62_v15  ;;  %195 = vmatprep.subr.mxu1 %v62_v15 }
  0x2e   :  { %104 = vmatpush1.msra.mxu0 %v61_v16  ;;  %211 = vmatpush1.msra.mxu1 %v61_v16 }
  0x2f   :  { %105 = vmatprep.subr.mxu0 %v60_v17  ;;  %196 = vmatprep.subr.mxu1 %v60_v17 }
  0x30   :  { %106 = vmatpush1.msra.mxu0 %v59_v18  ;;  %212 = vmatpush1.msra.mxu1 %v59_v18 }
  0x31   :  { %107 = vmatprep.subr.mxu0 %v58_v19  ;;  %197 = vmatprep.subr.mxu1 %v58_v19 }
  0x32   :  { %108 = vmatpush1.msra.mxu0 %v57_v20  ;;  %213 = vmatpush1.msra.mxu1 %v57_v20 }
  0x33   :  { %109 = vmatprep.subr.mxu0 %v56_v21  ;;  %198 = vmatprep.subr.mxu1 %v56_v21 }
  0x34   :  { %110 = vmatpush1.msra.mxu0 %v55_v22  ;;  %214 = vmatpush1.msra.mxu1 %v55_v22 }
  0x35   :  { %111 = vmatprep.subr.mxu0 %v54_v23  ;;  %199 = vmatprep.subr.mxu1 %v54_v23 }
  0x36   :  { %112 = vmatpush1.msra.mxu0 %v53_v24  ;;  %215 = vmatpush1.msra.mxu1 %v53_v24 }
  0x37   :  { %113 = vmatprep.subr.mxu0 %v52_v25  ;;  %200 = vmatprep.subr.mxu1 %v52_v25 }
  0x38   :  { %114 = vmatpush1.msra.mxu0 %v51_v26  ;;  %216 = vmatpush1.msra.mxu1 %v51_v26 }
  0x39   :  { %115 = vmatprep.subr.mxu0 %v50_v27  ;;  %201 = vmatprep.subr.mxu1 %v50_v27 }
  0x3a   :  { %116 = vmatpush1.msra.mxu0 %v49_v28  ;;  %217 = vmatpush1.msra.mxu1 %v49_v28 }
  0x3b   :  { %117 = vmatprep.subr.mxu0 %v48_v29  ;;  %202 = vmatprep.subr.mxu1 %v48_v29 }
  0x3c   :  { %118 = vmatpush1.msra.mxu0 %v47_v30  ;;  %218 = vmatpush1.msra.mxu1 %v47_v30 }
  0x3d   :  { %119 = vmatprep.subr.mxu0 %v46_v31  ;;  %203 = vmatprep.subr.mxu1 %v46_v31 }
  0x3e   :  { %120 = vmatpush1.msra.mxu0 %v45_v32  ;;  %219 = vmatpush1.msra.mxu1 %v45_v32 }
  0x3f   :  { %154 = vmatmul.mubr.f32.vlgmr.msra.gmra.mxu0 %v43_v33  ;;  %160 = vmatmul.mubr.f32.vlgmr.msra.gmra.mxu1 %v44_v34 }
  0xff   :  { %v155_v42 = vpop.f32.mrf.mxu0  ;;  %v161_v43 = vpop.f32.mrf.mxu1 }
 0x100   :  { %v156_v44 = vadd.f32 %v155_v42, %v82_v40  ;;  %v162_v45 = vadd.f32 %v161_v43, %v82_v40 }
 0x101   :  { %v157_v46 = vpop.f32.mrf.mxu0  ;;  %v163_v47 = vpop.f32.mrf.mxu1 }
 0x102   :  { %166 = vst [vmem:[#allocation7] sm:$0xff] %v156_v44  ;;  %168 = vst [vmem:[#allocation7 + $0x10] sm:$0xff] %v162_v45  ;;  %v158_v48 = vadd.f32 %v157_v46, %v86_v41  ;;  %v164_v49 = vadd.f32 %v163_v47, %v86_v41 }
 0x104   :  { %167 = vst [vmem:[#allocation7 + $0x8] sm:$0xff] %v158_v48  ;;  %169 = vst [vmem:[#allocation7 + $0x18] sm:$0xff] %v164_v49 }
 0x105   :  { %279 = shalt.err (!%p276_p0)
}
 0x106   :  { %181 = dma.vmem_to_hbm [thread:$0]  %s176_s27, 512, %s343_s3, [#allocation4], %s298_s22, %s298_s22, %s299_s23  }
 0x107   :  { %292 = dma.done.wait [#allocation4], 512  }
 0x108   :  { %293 = vsyncadd [#allocation4], 4294966784 }
 0x109   :  { %185 = vsyncpa [#allocation3], 1 }
 0x10a   :  { %186 = vsyncpa [#allocation6], 1 }
 0x10b   :  { %187 = vsyncpa [#allocation4], 1 }

</bundles_post_ra>
